<compile_context>
chip_gen: v5e
topology: v5e:2x2
jax: 0.10.0
libtpu: 0.0.40
codegen_flags: <defaults>
</compile_context>

<pallas_src>
import jax
import jax.numpy as jnp
from jax.experimental import pallas as pl
from jax.experimental.pallas import tpu as pltpu


def make_attention_kernel(num_heads: int, dim: int, use_mask: bool):
    head_dim = dim // num_heads

    def kernel(*refs):
        if use_mask:
            (x_ref, mask_ref, wqkv_ref, wproj_ref, bproj_ref,
             out_ref, attn_ref) = refs
        else:
            (x_ref, wqkv_ref, wproj_ref, bproj_ref,
             out_ref, attn_ref) = refs
            mask_ref = None

        n = x_ref.shape[1]

        x = x_ref[0]                                            # (N, C) bf16
        # Broadcast x across heads once so every matmul below is a single
        # head-batched dot_general instead of H unrolled tiny matmuls + concat.
        xb = jnp.broadcast_to(x[None, :, :], (num_heads, n, dim))   # (H, N, C)

        # QKV projection (scale already folded into the Q weight columns).
        qkv = jnp.einsum('hnc,hcd->hnd', xb, wqkv_ref[...],
                         preferred_element_type=jnp.float32)    # (H, N, 3*dh) f32

        q = qkv[:, :, 0 * head_dim:1 * head_dim].astype(jnp.bfloat16)
        k = qkv[:, :, 1 * head_dim:2 * head_dim].astype(jnp.bfloat16)
        v = qkv[:, :, 2 * head_dim:3 * head_dim].astype(jnp.bfloat16)

        # Scores for all heads in one batched matmul (f32 accumulation).
        s = jnp.einsum('hqd,hkd->hqk', q, k,
                       preferred_element_type=jnp.float32)      # (H, N, N)

        if use_mask:
            key_keep = mask_ref[0] > 0.0                        # (N,) computed once
            s = jnp.where(key_keep[None, None, :], s, -jnp.inf)

        # Softmax over keys, kept in f32 (v5e VPU/EUP have no bf16).
        m = jnp.max(s, axis=-1, keepdims=True)
        e = jnp.exp(s - m)
        denom = jnp.sum(e, axis=-1, keepdims=True)
        p = e * pl.reciprocal(denom, approx=True)               # (H, N, N) f32

        attn_ref[0] = p                                         # returned attention

        # Context for all heads in one batched matmul.
        ctx = jnp.einsum('hqk,hkd->hqd', p.astype(jnp.bfloat16), v,
                         preferred_element_type=jnp.float32)    # (H, N, dh)

        # Output projection: per-head (dh -> C) matmuls summed over heads.
        # Equivalent to concat(ctx_h, axis=-1) @ w_proj, with no concatenate.
        outh = jnp.einsum('hnd,hdc->hnc', ctx.astype(jnp.bfloat16), wproj_ref[...],
                          preferred_element_type=jnp.float32)   # (H, N, C)
        out_ref[0] = jnp.sum(outh, axis=0) + bproj_ref[...]

    return kernel


def attention_pallas(x, mask, w_qkv, w_proj, b_proj, num_heads):
    """Multi-head self-attention matching the PyTorch `Attention` module.

    x: (B, N, C); mask: (B, N) (1 = keep) or None.
    w_qkv: (C, 3C) so that x @ w_qkv == qkv linear (qkv_bias=False).
    w_proj: (C, C), b_proj: (1, C).
    Returns (out (B, N, C) f32, attn (B, H, N, N) f32) — same as the module.
    """
    B, N, C = x.shape
    assert C % num_heads == 0
    H = num_heads
    dh = C // H
    scale = dh ** (-0.5)

    # ---- weight prep (plain XLA, done once per call) ------------------------
    w_qkv_f32 = w_qkv.astype(jnp.float32)
    # Fold the softmax scale into the Q columns (no qkv bias, so exact).
    w_qkv_f32 = w_qkv_f32.at[:, :C].multiply(scale)
    # (C, 3C) with columns ordered (3, H, dh)  ->  (H, C, 3*dh) per-head slabs.
    w_qkv_h = (w_qkv_f32.reshape(C, 3, H, dh)
                        .transpose(2, 0, 1, 3)
                        .reshape(H, C, 3 * dh)
                        .astype(jnp.bfloat16))
    # (C, C) -> (H, dh, C) per-head slabs of the output projection.
    w_proj_h = w_proj.astype(jnp.float32).reshape(H, dh, C).astype(jnp.bfloat16)
    b_proj_f32 = b_proj.astype(jnp.float32).reshape(1, C)

    x_bf16 = x.astype(jnp.bfloat16)

    use_mask = mask is not None
    if use_mask:
        mask = mask.astype(jnp.float32)

    kernel = make_attention_kernel(H, C, use_mask)

    in_specs = [pl.BlockSpec((1, N, C), lambda b: (b, 0, 0))]          # x
    inputs = [x_bf16]
    if use_mask:
        in_specs.append(pl.BlockSpec((1, N), lambda b: (b, 0)))        # mask
        inputs.append(mask)
    in_specs += [
        pl.BlockSpec((H, C, 3 * dh), lambda b: (0, 0, 0)),             # w_qkv (broadcast)
        pl.BlockSpec((H, dh, C), lambda b: (0, 0, 0)),                 # w_proj (broadcast)
        pl.BlockSpec((1, C), lambda b: (0, 0)),                        # b_proj (broadcast)
    ]
    inputs += [w_qkv_h, w_proj_h, b_proj_f32]

    out_shapes = (
        jax.ShapeDtypeStruct((B, N, C), jnp.float32),
        jax.ShapeDtypeStruct((B, H, N, N), jnp.float32),
    )
    out_specs = [
        pl.BlockSpec((1, N, C), lambda b: (b, 0, 0)),
        pl.BlockSpec((1, H, N, N), lambda b: (b, 0, 0, 0)),
    ]

    # Per-grid-step VMEM budget: double-buffered blocks + rough intermediates,
    # clamped so it is valid on v5e/v6e (128 MiB) and v7x (64 MiB physical).
    blk_bytes = 2 * (N * C * 2 + N * 4 + H * C * 3 * dh * 2 + H * dh * C * 2
                     + C * 4 + N * C * 4 + H * N * N * 4)
    interm_bytes = (H * N * C * 2 + H * N * 3 * dh * 4
                    + 3 * H * N * N * 4 + 2 * H * N * C * 4)
    vmem_limit = int(min(48 * 1024 * 1024,
                         max(16 * 1024 * 1024, 2 * (blk_bytes + interm_bytes))))

    grid_spec = pltpu.PrefetchScalarGridSpec(
        num_scalar_prefetch=0,
        grid=(B,),
        in_specs=in_specs,
        out_specs=out_specs,
    )

    return pl.pallas_call(
        kernel,
        out_shape=out_shapes,
        grid_spec=grid_spec,
        compiler_params=pltpu.CompilerParams(
            dimension_semantics=("parallel",),
            vmem_limit_bytes=vmem_limit),
    )(*inputs)


def attention_reference(x, mask, w_qkv, w_proj, b_proj, num_heads):
    B, N, C = x.shape
    dh = C // num_heads
    scale = dh ** (-0.5)
    qkv = x @ w_qkv                                            # (B, N, 3C)
    qkv = qkv.reshape(B, N, 3, num_heads, dh).transpose(2, 0, 3, 1, 4)
    q, k, v = qkv[0], qkv[1], qkv[2]                           # (B, H, N, dh)
    attn = jnp.einsum('bhqd,bhkd->bhqk', q, k) * scale
    if mask is not None:
        attn = jnp.where(mask[:, None, None, :] > 0, attn, -jnp.inf)
    attn = jax.nn.softmax(attn, axis=-1)
    ctx = jnp.einsum('bhqk,bhkd->bhqd', attn, v)
    ctx = ctx.transpose(0, 2, 1, 3).reshape(B, N, C)
    out = ctx @ w_proj + b_proj[0]
    return out, attn


if __name__ == "__main__":
    # Small shapes consistent with the module: B=2, N=8 tokens, C=32 dim, 8 heads.
    B, N, C, H = 2, 8, 32, 8

    key = jax.random.PRNGKey(0)
    kx, kq, kp, kb = jax.random.split(key, 4)

    x = jax.random.normal(kx, (B, N, C), dtype=jnp.float32)
    # Deterministic synthetic parameters (qkv has no bias: qkv_bias=False default).
    w_qkv = (0.02 * jax.random.normal(kq, (C, 3 * C))).astype(jnp.float32)
    w_proj = (0.02 * jax.random.normal(kp, (C, C))).astype(jnp.float32)
    b_proj = (0.02 * jax.random.normal(kb, (1, C))).astype(jnp.float32)

    # Padding mask: every row keeps at least one key (fully-masked rows give NaN
    # in both the kernel and the PyTorch reference).
    mask = jnp.ones((B, N), dtype=jnp.float32)
    mask = mask.at[1, N - 3:].set(0.0)

    # TODO(synk): attn_drop / proj_drop are identity at inference, so they are omitted.
    for m in (None, mask):
        out, attn = attention_pallas(x, m, w_qkv, w_proj, b_proj, H)
        out = jax.block_until_ready(out)
        attn = jax.block_until_ready(attn)

        out_ref, attn_ref = attention_reference(x, m, w_qkv, w_proj, b_proj, H)
        # bf16 MXU operands + approx reciprocal -> relaxed tolerances vs the f32 ref.
        assert jnp.allclose(out, out_ref, atol=2e-2, rtol=2e-2), (
            "output mismatch, max |diff| = "
            f"{float(jnp.max(jnp.abs(out - out_ref)))}")
        assert jnp.allclose(attn, attn_ref, atol=1e-2, rtol=1e-2), (
            "attn mismatch, max |diff| = "
            f"{float(jnp.max(jnp.abs(attn - attn_ref)))}")

    print("KERNEL_OK")
</pallas_src>

<mosaic_0001>
module attributes {stable_mosaic.version = 11 : i64} {
  func.func @kernel(%arg0: i32, %arg1: memref<1x8x32xbf16, #tpu.memory_space<vmem>>, %arg2: memref<8x32x12xbf16, #tpu.memory_space<vmem>>, %arg3: memref<8x4x32xbf16, #tpu.memory_space<vmem>>, %arg4: memref<1x32xf32, #tpu.memory_space<vmem>>, %arg5: memref<1x8x32xf32, #tpu.memory_space<vmem>>, %arg6: memref<1x8x8x8xf32, #tpu.memory_space<vmem>>) attributes {dimension_semantics = [#tpu.dimension_semantics<parallel>], iteration_bounds = array<i64: 2>, scalar_prefetch = 0 : i64, scratch_operands = 0 : i64, tpu.core_type = #tpu.core_type<tc>, window_params = [{transform_indices = @transform_0, window_bounds = array<i64: 1, 8, 32>}, {pipeline_mode = #tpu.pipeline_mode<synchronous>, transform_indices = @transform_1, window_bounds = array<i64: 8, 32, 12>}, {pipeline_mode = #tpu.pipeline_mode<synchronous>, transform_indices = @transform_2, window_bounds = array<i64: 8, 4, 32>}, {pipeline_mode = #tpu.pipeline_mode<synchronous>, transform_indices = @transform_3, window_bounds = array<i64: 1, 32>}, {transform_indices = @transform_4, window_bounds = array<i64: 1, 8, 32>}, {transform_indices = @transform_5, window_bounds = array<i64: 1, 8, 8, 8>}]} {
    %c0 = arith.constant 0 : index
    %c0_0 = arith.constant 0 : index
    %c0_1 = arith.constant 0 : index
    %0 = vector.load %arg1[%c0, %c0_0, %c0_1] : memref<1x8x32xbf16, #tpu.memory_space<vmem>>, vector<1x8x32xbf16>
    %1 = vector.shape_cast %0 : vector<1x8x32xbf16> to vector<8x32xbf16>
    %2 = vector.shape_cast %1 : vector<8x32xbf16> to vector<1x8x32xbf16>
    %3 = vector.shape_cast %2 : vector<1x8x32xbf16> to vector<1x8x32xbf16>
    %4 = vector.broadcast %3 : vector<1x8x32xbf16> to vector<8x8x32xbf16>
    %c0_2 = arith.constant 0 : index
    %c0_3 = arith.constant 0 : index
    %c0_4 = arith.constant 0 : index
    %5 = vector.load %arg2[%c0_2, %c0_3, %c0_4] : memref<8x32x12xbf16, #tpu.memory_space<vmem>>, vector<8x32x12xbf16>
    "tpu.trace_start"() <{level = 10 : i32, message = "hnc,hcd->hnd"}> : () -> ()
    %cst = arith.constant dense<0.000000e+00> : vector<8x8x12xf32>
    %6 = tpu.matmul %4, %5, %cst {dimension_numbers = #tpu.dot_dimension_numbers<[2], [1], [1], [2], [0, 0, 0, 1, 1, 2], [0], [0]>} : vector<8x8x32xbf16>, vector<8x32x12xbf16>, vector<8x8x12xf32> -> vector<8x8x12xf32>
    "tpu.trace_stop"() : () -> ()
    %7 = vector.extract_strided_slice %6 {offsets = [0, 0, 0], sizes = [8, 8, 4], strides = [1, 1, 1]} : vector<8x8x12xf32> to vector<8x8x4xf32>
    %8 = arith.truncf %7 : vector<8x8x4xf32> to vector<8x8x4xbf16>
    %9 = vector.extract_strided_slice %6 {offsets = [0, 0, 4], sizes = [8, 8, 4], strides = [1, 1, 1]} : vector<8x8x12xf32> to vector<8x8x4xf32>
    %10 = arith.truncf %9 : vector<8x8x4xf32> to vector<8x8x4xbf16>
    %11 = vector.extract_strided_slice %6 {offsets = [0, 0, 8], sizes = [8, 8, 4], strides = [1, 1, 1]} : vector<8x8x12xf32> to vector<8x8x4xf32>
    %12 = arith.truncf %11 : vector<8x8x4xf32> to vector<8x8x4xbf16>
    "tpu.trace_start"() <{level = 10 : i32, message = "hqd,hkd->hqk"}> : () -> ()
    %cst_5 = arith.constant dense<0.000000e+00> : vector<8x8x8xf32>
    %13 = tpu.matmul %8, %10, %cst_5 {dimension_numbers = #tpu.dot_dimension_numbers<[2], [2], [1], [1], [0, 0, 0, 1, 1, 1], [0], [0]>} : vector<8x8x4xbf16>, vector<8x8x4xbf16>, vector<8x8x8xf32> -> vector<8x8x8xf32>
    "tpu.trace_stop"() : () -> ()
    %cst_6 = arith.constant dense<0xFF800000> : vector<8x8xf32>
    %14 = vector.multi_reduction <maximumf>, %13, %cst_6 [2] : vector<8x8x8xf32> to vector<8x8xf32>
    %15 = vector.shape_cast %14 : vector<8x8xf32> to vector<8x8x1xf32>
    %16 = vector.broadcast %15 : vector<8x8x1xf32> to vector<8x8x8xf32>
    %17 = arith.subf %13, %16 : vector<8x8x8xf32>
    %18 = math.exp %17 : vector<8x8x8xf32>
    %cst_7 = arith.constant dense<0.000000e+00> : vector<8x8xf32>
    %19 = vector.multi_reduction <add>, %18, %cst_7 [2] : vector<8x8x8xf32> to vector<8x8xf32>
    %20 = vector.shape_cast %19 : vector<8x8xf32> to vector<8x8x1xf32>
    %21 = tpu.reciprocal %20 {approx = true} : vector<8x8x1xf32> -> vector<8x8x1xf32>
    %22 = vector.broadcast %21 : vector<8x8x1xf32> to vector<8x8x8xf32>
    %23 = arith.mulf %18, %22 : vector<8x8x8xf32>
    %c0_8 = arith.constant 0 : index
    %c0_9 = arith.constant 0 : index
    %c0_10 = arith.constant 0 : index
    %c0_11 = arith.constant 0 : index
    %24 = vector.load %arg6[%c0_8, %c0_9, %c0_10, %c0_11] : memref<1x8x8x8xf32, #tpu.memory_space<vmem>>, vector<1x8x8x8xf32>
    %25 = vector.shape_cast %24 : vector<1x8x8x8xf32> to vector<8x8x8xf32>
    %26 = vector.shape_cast %23 : vector<8x8x8xf32> to vector<1x8x8x8xf32>
    tpu.vector_store %arg6[%c0_8, %c0_9, %c0_10, %c0_11], %26 {strides = array<i32>} : memref<1x8x8x8xf32, #tpu.memory_space<vmem>>, vector<1x8x8x8xf32>,
    %27 = arith.truncf %23 : vector<8x8x8xf32> to vector<8x8x8xbf16>
    "tpu.trace_start"() <{level = 10 : i32, message = "hqk,hkd->hqd"}> : () -> ()
    %cst_12 = arith.constant dense<0.000000e+00> : vector<8x8x4xf32>
    %28 = tpu.matmul %27, %12, %cst_12 {dimension_numbers = #tpu.dot_dimension_numbers<[2], [1], [1], [2], [0, 0, 0, 1, 1, 2], [0], [0]>} : vector<8x8x8xbf16>, vector<8x8x4xbf16>, vector<8x8x4xf32> -> vector<8x8x4xf32>
    "tpu.trace_stop"() : () -> ()
    %29 = arith.truncf %28 : vector<8x8x4xf32> to vector<8x8x4xbf16>
    %c0_13 = arith.constant 0 : index
    %c0_14 = arith.constant 0 : index
    %c0_15 = arith.constant 0 : index
    %30 = vector.load %arg3[%c0_13, %c0_14, %c0_15] : memref<8x4x32xbf16, #tpu.memory_space<vmem>>, vector<8x4x32xbf16>
    "tpu.trace_start"() <{level = 10 : i32, message = "hnd,hdc->hnc"}> : () -> ()
    %cst_16 = arith.constant dense<0.000000e+00> : vector<8x8x32xf32>
    %31 = tpu.matmul %29, %30, %cst_16 {dimension_numbers = #tpu.dot_dimension_numbers<[2], [1], [1], [2], [0, 0, 0, 1, 1, 2], [0], [0]>} : vector<8x8x4xbf16>, vector<8x4x32xbf16>, vector<8x8x32xf32> -> vector<8x8x32xf32>
    "tpu.trace_stop"() : () -> ()
    %cst_17 = arith.constant dense<0.000000e+00> : vector<8x32xf32>
    %32 = vector.multi_reduction <add>, %31, %cst_17 [0] : vector<8x8x32xf32> to vector<8x32xf32>
    %c0_18 = arith.constant 0 : index
    %c0_19 = arith.constant 0 : index
    %33 = vector.load %arg4[%c0_18, %c0_19] : memref<1x32xf32, #tpu.memory_space<vmem>>, vector<1x32xf32>
    %34 = vector.broadcast %33 : vector<1x32xf32> to vector<8x32xf32>
    %35 = arith.addf %32, %34 : vector<8x32xf32>
    %c0_20 = arith.constant 0 : index
    %c0_21 = arith.constant 0 : index
    %c0_22 = arith.constant 0 : index
    %36 = vector.load %arg5[%c0_20, %c0_21, %c0_22] : memref<1x8x32xf32, #tpu.memory_space<vmem>>, vector<1x8x32xf32>
    %37 = vector.shape_cast %36 : vector<1x8x32xf32> to vector<8x32xf32>
    %38 = vector.shape_cast %35 : vector<8x32xf32> to vector<1x8x32xf32>
    tpu.vector_store %arg5[%c0_20, %c0_21, %c0_22], %38 {strides = array<i32>} : memref<1x8x32xf32, #tpu.memory_space<vmem>>, vector<1x8x32xf32>,
    return
  }
  func.func @transform_0(%arg0: i32) -> (i32, i32, i32) {
    %c0_i32 = arith.constant 0 : i32
    %c0_i32_0 = arith.constant 0 : i32
    %c0_i32_1 = arith.constant 0 : i32
    return %arg0, %c0_i32, %c0_i32_0 : i32, i32, i32
  }
  func.func @transform_1(%arg0: i32) -> (i32, i32, i32) {
    %c0_i32 = arith.constant 0 : i32
    %c0_i32_0 = arith.constant 0 : i32
    %c0_i32_1 = arith.constant 0 : i32
    %c0_i32_2 = arith.constant 0 : i32
    return %c0_i32, %c0_i32_0, %c0_i32_1 : i32, i32, i32
  }
  func.func @transform_2(%arg0: i32) -> (i32, i32, i32) {
    %c0_i32 = arith.constant 0 : i32
    %c0_i32_0 = arith.constant 0 : i32
    %c0_i32_1 = arith.constant 0 : i32
    %c0_i32_2 = arith.constant 0 : i32
    return %c0_i32, %c0_i32_0, %c0_i32_1 : i32, i32, i32
  }
  func.func @transform_3(%arg0: i32) -> (i32, i32) {
    %c0_i32 = arith.constant 0 : i32
    %c0_i32_0 = arith.constant 0 : i32
    %c0_i32_1 = arith.constant 0 : i32
    return %c0_i32, %c0_i32_0 : i32, i32
  }
  func.func @transform_4(%arg0: i32) -> (i32, i32, i32) {
    %c0_i32 = arith.constant 0 : i32
    %c0_i32_0 = arith.constant 0 : i32
    %c0_i32_1 = arith.constant 0 : i32
    return %arg0, %c0_i32, %c0_i32_0 : i32, i32, i32
  }
  func.func @transform_5(%arg0: i32) -> (i32, i32, i32, i32) {
    %c0_i32 = arith.constant 0 : i32
    %c0_i32_0 = arith.constant 0 : i32
    %c0_i32_1 = arith.constant 0 : i32
    %c0_i32_2 = arith.constant 0 : i32
    return %arg0, %c0_i32, %c0_i32_0, %c0_i32_1 : i32, i32, i32, i32
  }
}

</mosaic_0001>

<bundles_post_ra>
// kernel: tpu_custom_call.1
= control target key start
LH: loop header
LB: loop body
LE: loop exit
PB: predicated region body
PF: predicated region fallthrough
CT: control target
= control target key end

     0   :  { %11 = vsyncpa [#allocation3], 0  ;;  %s1966_s0 = inlined_call_operand.vmem [shape: bf16[2,8,32], index: 0, kind: input, shape index: {}]   ;;  %s1967_s1 = inlined_call_operand.vmem [shape: bf16[8,32,12], index: 1, kind: input, shape index: {}]   ;;  %s1968_s2 = inlined_call_operand.vmem [shape: bf16[8,4,32], index: 2, kind: input, shape index: {}]   ;;  %s1969_s3 = inlined_call_operand.vmem [shape: f32[1,32], index: 3, kind: input, shape index: {}]   ;;  %s1970_s4 = inlined_call_operand.hbm [shape: f32[2,8,32], index: 4, kind: output, shape index: {0}]   ;;  %s1971_s5 = inlined_call_operand.hbm [shape: f32[2,8,8,8], index: 5, kind: output, shape index: {1}]  }
   0x1   :  { %13 = vsyncpa [#allocation3 + $0x1], 0 }
   0x2   :  { %14 = vsyncpa [#allocation5], 0 }
   0x3   :  { %16 = vsyncpa [#allocation5 + $0x1], 0  ;;  %s1602_s18 = smov 0   ;;  %s1604_s19 = smov 0  }
   0x4   :  { %s1606_s20 = smov 0   ;;  %s1608_s21 = smov 0  }
   0x5 LB: > { %s1623_s22 = sadd.s32 4294967295, %s1566_s21   ;;  %s1264_s23 = sadd.s32 4294967294, %s1566_s21   ;;  %s1566_s21 = sphi %s1608_s21, %s1977_s21   ;;  %s1562_s20 = sphi %s1606_s20, %s1976_s20   ;;  %s1558_s19 = sphi %s1604_s19, %s1975_s19   ;;  %s1554_s18 = sphi %s1602_s18, %s1974_s18  }
   0x6   : > { %s1627_s24 = sadd.s32 1, %s1566_s21   ;;  %s118_s25 = sadd.s32 1, %s1562_s20 }
   0x7   : > { %s115_s26 = ssub.s32 %s1566_s21, %s1627_s24  ;;  %p128_p0 = scmp.ne.s32.totalorder %s1562_s20, %s1558_s19 }
   0x8   : > { %p116_p1 = scmp.eq.s32.totalorder %s115_s26, 0  ;;  %p129_p2 = scmp.eq.s32.totalorder %s1623_s22, 1 }
   0x9   : > { %p134_p3 = scmp.ne.s32.totalorder %s1558_s19, %s1554_s18  ;;  %p135_p4 = scmp.eq.s32.totalorder %s1264_s23, 1 }
   0xa   : > { %s1638_s27 = scalar_select %p116_p1, %s1562_s20, %s118_s25  }
   0xb   : > { %p1640_p5 = por %p129_p2, %p128_p0  ;;  %p1644_p6 = por %p135_p4, %p134_p3 }
   0xc   : > { %p1267_p7 = scmp.ge.s32.totalorder %s1566_s21, 1  ;;  %p195_p8 = scmp.lt.s32.totalorder %s1566_s21, 3 }
   0xe   : > { %p196_p9 = pnand %p1267_p7, %p195_p8 }
   0xf   : > { %p227_p10 = scmp.lt.s32.totalorder (!%p196_p9), %s1623_s22, 1  ;;  %s1568_s10 = smov (!%p196_p9), 124  }
  0x10   : > { %199 = sbr.rel (%p196_p9) target bundleno = 1030 (0x406), region = 36  ;;  %s1569_s11 = smov (!%p196_p9), 120  }
  0x11   : > { %s1824_s12 = sand.u32 (!%p196_p9), 1, %s1558_s19   ;;  %s1390_s23 = sshll.u32 (!%p196_p9), %s1623_s22, 6 }
  0x12   : > { %s1165_s30 = scalar_lea.hbm (!%p196_p9), %s1971_s5, %s1390_s23  ;;  %s1140_s7 = scalar_lea.sflag (!%p196_p9), [#allocation5], %s1824_s12 }
  0x15   : > { %v1375_v0 = vld [vmem:[%s1967_s1 + $0x8] sm:$0xff]  ;;  %v1377_v1 = vld [vmem:[%s1967_s1 + $0x18] sm:$0xff]  ;;  %v1374_v3 = vld [vmem:[%s1967_s1] sm:$0xff]  ;;  %s228_s15 = scalar_select %p227_p10, %s1623_s22, 1  ;;  %vm277_vm0 = vcmask 261120   ;;  %vm482_vm1 = vcmask 31744  }
  0x16   : > { %v1379_v2 = vld [vmem:[%s1967_s1 + $0x28] sm:$0xff]  ;;  %287 = vmatpush.bf16.msra.mxu0 %v1375_v0  ;;  %312 = vmatpush.bf16.msra.mxu1 %v1377_v1  ;;  %v1376_v4 = vld [vmem:[%s1967_s1 + $0x10] sm:$0xff]  ;;  %v1381_v5 = vld [vmem:[%s1967_s1 + $0x38] sm:$0xff]  ;;  %vm780_vm2 = vcmask 1043456   ;;  %vm670_vm3 = vcmask 64512   ;;  %vm963_vm4 = vcmask 1041408  }
  0x17   : > { %337 = vmatpush.bf16.msra.mxu2 %v1379_v2  ;;  %v1378_v6 = vld [vmem:[%s1967_s1 + $0x20] sm:$0xff]  ;;  %v1385_v7 = vld [vmem:[%s1967_s1 + $0x58] sm:$0xff]  ;;  %s1270_s6 = sshll.u32 %s228_s15, 2  ;;  %362 = vmatpush.bf16.msra.mxu3 %v1381_v5  ;;  %v1380_v8 = vld [vmem:[%s1967_s1 + $0x30] sm:$0xff] }
  0x18   : > { %v1383_v9 = vld [vmem:[%s1967_s1 + $0x48] sm:$0xff]  ;;  %s230_s13 = scalar_lea.vmem %s1966_s0, %s1270_s6  ;;  %v1389_v11 = vld [vmem:[%s1967_s1 + $0x78] sm:$0xff]  ;;  %v1384_v12 = vld [vmem:[%s1967_s1 + $0x50] sm:$0xff]  ;;  %s1168_s6 = sshll.u32 %s1165_s30, 4  ;;  %s1169_s6 = int_to_ptr.hbm [resolvable:$true] %s1168_s6 }
  0x19   : > { %v232_v10 = vld [vmem:[%s230_s13] sm:$0xf]  ;;  %v1387_v14 = vld [vmem:[%s1967_s1 + $0x68] sm:$0xff]  ;;  %v1388_v15 = vld [vmem:[%s1967_s1 + $0x70] sm:$0xff]  ;;  %s1269_s13 = sshll.u32 %s1824_s12, 6  ;;  %s1486_s8 = sshra.s32 %s1169_s6, 4  ;;  %s1487_s8 = int_to_ptr.hbm [resolvable:$true] %s1486_s8 }
  0x1a   : > { %288 = vmatpush.bf16.msra.mxu0 %v1374_v3  ;;  %313 = vmatpush.bf16.msra.mxu1 %v1376_v4  ;;  %v1382_v13 = vld [vmem:[%s1967_s1 + $0x40] sm:$0xff]  ;;  %s1828_s14 = scalar_lea.vmem [#allocation4], %s1269_s13  ;;  %s1488_s9 = scalar_lea.hbm %s1487_s8, 64 }
  0x1b   : > { %338 = vmatpush.bf16.msra.mxu2 %v1378_v6  ;;  %363 = vmatpush.bf16.msra.mxu3 %v1380_v8  ;;  %v1386_v16 = vld [vmem:[%s1967_s1 + $0x60] sm:$0xff]  ;;  %s1166_s17 = sshll.u32 %s1828_s14, 4  ;;  %p1489_p11 = scmp.ne.s32.totalorder %s1487_s8, %s1488_s9  ;;  %s1167_s17 = int_to_ptr.vmem [resolvable:$true] %s1166_s17 }
  0x1c   : > { %p1493_p0 = scmp.lt.s32.totalorder %s1487_s8, %s1971_s5 }
  0x1d   : > { %1279 = vmatmul.msk.bf16.vlgmr.msra.gmra.mxu0 %vm277_vm0, %v232_v10  ;;  %1288 = vmatmul.msk.bf16.vlgmr.msra.gmra.mxu1 %vm277_vm0, %v232_v10  ;;  %p1490_p12 = pnand %p1489_p11, %p1640_p5 }
  0x1e   : > { %412 = vmatpush.bf16.msrb.mxu1 %v1385_v7  ;;  %387 = vmatpush.bf16.msrb.mxu0 %v1383_v9 }
  0x1f   : > { %1297 = vmatmul.msk.bf16.vlgmr.msra.gmra.mxu2 %vm277_vm0, %v232_v10  ;;  %462 = vmatpush.bf16.msrb.mxu3 %v1389_v11  ;;  %p1491_p13 = pneg %p1490_p12 }
  0x20   : > { %1306 = vmatmul.msk.bf16.vlgmr.msra.gmra.mxu3 %vm277_vm0, %v232_v10  ;;  %437 = vmatpush.bf16.msrb.mxu2 %v1387_v14 }
  0x22   : > { %413 = vmatpush.bf16.msrb.mxu1 %v1384_v12  ;;  %388 = vmatpush.bf16.msrb.mxu0 %v1382_v13 }
  0x23   : > { %463 = vmatpush.bf16.msrb.mxu3 %v1388_v15 }
  0x24   : > { %438 = vmatpush.bf16.msrb.mxu2 %v1386_v16 }
  0x2d   : > { %1324 = vmatmul.msk.bf16.vlgmr.msrb.gmra.mxu1 %vm277_vm0, %v232_v10  ;;  %1315 = vmatmul.msk.bf16.vlgmr.msrb.gmra.mxu0 %vm277_vm0, %v232_v10 }
  0x2f   : > { %1333 = vmatmul.msk.bf16.vlgmr.msrb.gmra.mxu2 %vm277_vm0, %v232_v10 }
  0x30   : > { %1342 = vmatmul.msk.bf16.vlgmr.msrb.gmra.mxu3 %vm277_vm0, %v232_v10 }
  0x9a   : > { %v290_v17 = vpop.f32.mrf.mxu0  ;;  %v315_v18 = vpop.f32.mrf.mxu1 }
  0x9b   : > { %v469_v19 = vpack.c.bf16 %v290_v17, %v290_v17  ;;  %v1711_v20 = vpack.c.bf16 %v315_v18, %v315_v18 }
  0x9d   : > { %v478_v21 = vunpack.c.l.b16 %v469_v19  ;;  %v503_v23 = vunpack.c.l.b16 %v1711_v20 }
  0x9f   : > { %v1713_v22 = vpack.c.b16 %v478_v21, %v478_v21  ;;  %v1720_v31 = vpack.c.b16 %v503_v23, %v503_v23 }
  0xa1   : > { %480 = vrot.lane.b32.xlu1 %v1713_v22, %s1568_s10 }
  0xa2   : > { %v340_v24 = vpop.f32.mrf.mxu2  ;;  %v292_v26 = vpop.f32.mrf.mxu0 }
  0xa3   : > { %v471_v25 = vpack.c.bf16 %v340_v24, %v340_v24  ;;  %v317_v27 = vpop.f32.mrf.mxu1  ;;  %v365_v28 = vpop.f32.mrf.mxu3 }
  0xa4   : > { %v1718_v30 = vpack.c.bf16 %v365_v28, %v365_v28 }
  0xa5   : > { %v527_v29 = vunpack.c.l.b16 %v471_v25 }
  0xa6   : > { %v551_v33 = vunpack.c.l.b16 %v1718_v30 }
  0xa7   : > { %v528_v32 = vpack.c.b16 %v527_v29, %v527_v29 }
  0xa8   : > { %v552_v39 = vpack.c.b16 %v551_v33, %v551_v33 }
  0xa9   : > { %529 = vrot.lane.b32.xlu0 %v528_v32, %s1568_s10  ;;  %505 = vrot.lane.b32.xlu1 %v1720_v31, %s1568_s10 }
  0xaa   : > { %v342_v34 = vpop.f32.mrf.mxu2  ;;  %v390_v36 = vpop.f32.mrf.mxu0 }
  0xab   : > { %v415_v35 = vpop.f32.mrf.mxu1  ;;  %v367_v38 = vpop.f32.mrf.mxu3  ;;  %v473_v40 = vpack.c.bf16 %v390_v36, %v390_v36 }
  0xac   : > { %v1726_v37 = vpack.c.bf16 %v415_v35, %v415_v35 }
  0xad   : > { %v575_v43 = vunpack.c.l.b16 %v473_v40 }
  0xae   : > { %v599_v41 = vunpack.c.l.b16 %v1726_v37 }
  0xaf   : > { %v1734_v49 = vpack.c.b16 %v575_v43, %v575_v43 }
  0xb0   : > { %v1729_v42 = vpack.c.b16 %v599_v41, %v599_v41 }
  0xb1   : > { %553 = vrot.lane.b32.xlu0 %v552_v39, %s1568_s10 }
  0xb2   : > { %601 = vrot.lane.b32.xlu1 %v1729_v42, %s1568_s10  ;;  %v440_v44 = vpop.f32.mrf.mxu2  ;;  %v392_v47 = vpop.f32.mrf.mxu0 }
  0xb3   : > { %v475_v45 = vpack.c.bf16 %v440_v44, %v440_v44  ;;  %v417_v46 = vpop.f32.mrf.mxu1  ;;  %v465_v48 = vpop.f32.mrf.mxu3 }
  0xb4   : > { %v476_v51 = vpack.c.bf16 %v465_v48, %v465_v48 }
  0xb5   : > { %v623_v50 = vunpack.c.l.b16 %v475_v45 }
  0xb6   : > { %v647_v53 = vunpack.c.l.b16 %v476_v51 }
  0xb7   : > { %v1736_v52 = vpack.c.b16 %v623_v50, %v623_v50 }
  0xb8   : > { %v1743_v56 = vpack.c.b16 %v647_v53, %v647_v53 }
  0xb9   : > { %577 = vrot.lane.b32.xlu0 %v1734_v49, %s1568_s10  ;;  %625 = vrot.lane.b32.xlu2 %v1736_v52, %s1568_s10 }
  0xba   : > { %839 = vrot.lane.b32.xlu1 %v552_v39, %s1569_s11  ;;  %v442_v54 = vpop.f32.mrf.mxu2 }
  0xbb   : > { %v467_v55 = vpop.f32.mrf.mxu3 }
  0xc1   : > { %818 = vrot.lane.b32.xlu0 %v528_v32, %s1569_s11  ;;  %649 = vrot.lane.b32.xlu2 %v1743_v56, %s1568_s10 }
 0x113   : > { %v481_v57 = vpop.permute.xlu1 %480  ;;  %v626_v59 = vpop.permute.xlu2 %625 }
 0x114   : > { %v487_v58 = vsel %vm482_vm1, %v481_v57, 0  ;;  %v631_v61 = vsel %vm482_vm1, %v626_v59, 0 }
 0x115   : > { %496 = vmatpush.bf16.xpose.msra.mxu0 %v487_v58 }
 0x11b   : > { %v530_v60 = vpop.permute.xlu0 %529  ;;  %v506_v63 = vpop.permute.xlu1 %505 }
 0x11c   : > { %v535_v62 = vsel %vm482_vm1, %v530_v60, 0  ;;  %v511_v0 = vsel %vm482_vm1, %v506_v63, 0  ;;  %1343 = vmatmul.msk.bf16.vlgmr.msra.gmra.mxu0 %vm482_vm1, %v469_v19  ;;  %v650_v1 = vpop.permute.xlu2 %649 }
 0x11d   : > { %544 = vmatpush.bf16.xpose.msra.mxu2 %v535_v62  ;;  %520 = vmatpush.bf16.xpose.msra.mxu1 %v511_v0  ;;  %v655_v3 = vsel %vm482_vm1, %v650_v1, 0 }
 0x123   : > { %v554_v2 = vpop.permute.xlu0 %553 }
 0x124   : > { %v559_v4 = vsel %vm482_vm1, %v554_v2, 0  ;;  %1345 = vmatmul.msk.bf16.vlgmr.msra.gmra.mxu2 %vm482_vm1, %v471_v25  ;;  %v602_v5 = vpop.permute.xlu1 %601  ;;  %1344 = vmatmul.msk.bf16.vlgmr.msra.gmra.mxu1 %vm482_vm1, %v1711_v20 }
 0x125   : > { %640 = vmatpush.bf16.xpose.msrb.mxu2 %v631_v61  ;;  %568 = vmatpush.bf16.xpose.msra.mxu3 %v559_v4  ;;  %v607_v6 = vsel %vm482_vm1, %v602_v5, 0 }
 0x126   : > { %616 = vmatpush.bf16.xpose.msrb.mxu1 %v607_v6 }
 0x12b   : > { %v578_v7 = vpop.permute.xlu0 %577 }
 0x12c   : > { %v583_v8 = vsel %vm482_vm1, %v578_v7, 0  ;;  %1346 = vmatmul.msk.bf16.vlgmr.msra.gmra.mxu3 %vm482_vm1, %v1718_v30  ;;  %v840_v9 = vpop.permute.xlu1 %839 }
 0x12d   : > { %664 = vmatpush.bf16.xpose.msrb.mxu3 %v655_v3  ;;  %592 = vmatpush.bf16.xpose.msrb.mxu0 %v583_v8  ;;  %v845_v10 = vsel %vm780_vm2, %v840_v9, 0 }
 0x133   : > { %v819_v11 = vpop.permute.xlu0 %818 }
 0x134   : > { %v824_v12 = vsel %vm780_vm2, %v819_v11, 0  ;;  %1347 = vmatmul.msk.bf16.vlgmr.msrb.gmra.mxu0 %vm482_vm1, %v473_v40  ;;  %1349 = vmatmul.msk.bf16.vlgmr.msrb.gmra.mxu2 %vm482_vm1, %v475_v45 }
 0x135   : > { %854 = vmatpush.bf16.msra.mxu3 %v845_v10  ;;  %833 = vmatpush.bf16.msra.mxu2 %v824_v12 }
 0x136   : > { %1348 = vmatmul.msk.bf16.vlgmr.msrb.gmra.mxu1 %vm482_vm1, %v1726_v37 }
 0x13c   : > { %1350 = vmatmul.msk.bf16.vlgmr.msrb.gmra.mxu3 %vm482_vm1, %v476_v51 }
 0x199   : > { %v498_v13 = vpop.f32.mrf.mxu0 }
 0x19a   : > { %v671_v14 = vsel %vm670_vm3, %v498_v13, -inf }
 0x19b   : > { %672 = vmax.xlane.f32.xlu1 %v671_v14 }
 0x1a1   : > { %v500_v15 = vpop.f32.mrf.mxu0  ;;  %v522_v16 = vpop.f32.mrf.mxu1 }
 0x1a2   : > { %v674_v17 = vsel %vm670_vm3, %v522_v16, -inf }
 0x1a3   : > { %675 = vmax.xlane.f32.xlu2 %v674_v17 }
 0x1a7   : > { %v546_v18 = vpop.f32.mrf.mxu2 }
 0x1a8   : > { %v677_v20 = vsel %vm670_vm3, %v546_v18, -inf }
 0x1a9   : > { %v524_v19 = vpop.f32.mrf.mxu1 }
 0x1ab   : > { %678 = vmax.xlane.f32.xlu2 %v677_v20 }
 0x1af   : > { %v548_v21 = vpop.f32.mrf.mxu2  ;;  %v570_v23 = vpop.f32.mrf.mxu3 }
 0x1b0   : > { %v680_v24 = vsel %vm670_vm3, %v570_v23, -inf }
 0x1b1   : > { %681 = vmax.xlane.f32.xlu0 %v680_v24  ;;  %v594_v25 = vpop.f32.mrf.mxu0 }
 0x1b2   : > { %v683_v27 = vsel %vm670_vm3, %v594_v25, -inf }
 0x1b3   : > { %v1773_v26 = vpop.f32.mrf.mxu1  ;;  %684 = vmax.xlane.f32.xlu1 %v683_v27 }
 0x1b4   : > { %v686_v28 = vsel %vm670_vm3, %v1773_v26, -inf }
 0x1b5   : > { %687 = vmax.xlane.f32.xlu2 %v686_v28 }
 0x1b7   : > { %v572_v29 = vpop.f32.mrf.mxu3  ;;  %v642_v30 = vpop.f32.mrf.mxu2 }
 0x1b8   : > { %v689_v34 = vsel %vm670_vm3, %v642_v30, -inf }
 0x1b9   : > { %v596_v32 = vpop.f32.mrf.mxu0 }
 0x1bb   : > { %v620_v33 = vpop.f32.mrf.mxu1 }
 0x1bd   : > { %690 = vmax.xlane.f32.xlu2 %v689_v34 }
 0x1bf   : > { %v644_v35 = vpop.f32.mrf.mxu2  ;;  %v666_v36 = vpop.f32.mrf.mxu3 }
 0x1c0   : > { %v692_v37 = vsel %vm670_vm3, %v666_v36, -inf }
 0x1c1   : > { %693 = vmax.xlane.f32.xlu0 %v692_v37 }
 0x1c7   : > { %v668_v38 = vpop.f32.mrf.mxu3 }
 0x1cc   : > { %797 = vrot.lane.b32.xlu1 %v1720_v31, %s1569_s11 }
 0x20e   : > { %v673_v39 = vpop.xlane.xlu1 %672 }
 0x20f   : > { %v695_v40 = vsub.f32 %v498_v13, %v673_v39 }
 0x211   : > { %v703_v41 = vmul.f32 1.442695, %v695_v40 }
 0x213   : > { %1440 = vpow2.f32 %v703_v41 }
 0x216   : > { %v676_v43 = vpop.xlane.xlu2 %675 }
 0x217   : > { %v696_v44 = vsub.f32 %v522_v16, %v676_v43 }
 0x219   : > { %v1782_v45 = vpop.eup %1440  ;;  %v705_v46 = vmul.f32 1.442695, %v696_v44 }
 0x21a   : > { %v719_v47 = vsel %vm670_vm3, %v1782_v45, 0.0 }
 0x21b   : > { %1442 = vpow2.f32 %v705_v46  ;;  %720 = vadd.xlane.f32.xlu2 %v719_v47 }
 0x21e   : > { %v679_v48 = vpop.xlane.xlu2 %678 }
 0x21f   : > { %v697_v50 = vsub.f32 %v546_v18, %v679_v48 }
 0x221   : > { %v1443_v51 = vpop.eup %1442  ;;  %v707_v53 = vmul.f32 1.442695, %v697_v50 }
 0x222   : > { %v722_v31 = vsel %vm670_vm3, %v1443_v51, 0.0 }
 0x223   : > { %1444 = vpow2.f32 %v707_v53  ;;  %723 = vadd.xlane.f32.xlu2 %v722_v31 }
 0x224   : > { %v682_v54 = vpop.xlane.xlu0 %681 }
 0x225   : > { %v698_v55 = vsub.f32 %v570_v23, %v682_v54 }
 0x226   : > { %v685_v62 = vpop.xlane.xlu1 %684 }
 0x227   : > { %v709_v57 = vmul.f32 1.442695, %v698_v55  ;;  %v699_v2 = vsub.f32 %v594_v25, %v685_v62  ;;  %v953_v62 = vld [vmem:[%s1968_s2 + $0x2] sm:$0x3] }
 0x228   : > { %v688_v1 = vpop.xlane.xlu2 %687 }
 0x229   : > { %1446 = vpow2.f32 %v709_v57  ;;  %v1787_v58 = vpop.eup %1444  ;;  %v711_v5 = vmul.f32 1.442695, %v699_v2  ;;  %v700_v7 = vsub.f32 %v1773_v26, %v688_v1  ;;  %v955_v2 = vld [vmem:[%s1968_s2 + $0x6] sm:$0x3] }
 0x22a   : > { %v725_v59 = vsel %vm670_vm3, %v1787_v58, 0.0 }
 0x22b   : > { %726 = vadd.xlane.f32.xlu0 %v725_v59  ;;  %1448 = vpow2.f32 %v711_v5 }
 0x22f   : > { %v1791_v60 = vpop.eup %1446 }
 0x230   : > { %v728_v61 = vsel %vm670_vm3, %v1791_v60, 0.0  ;;  %v691_v3 = vpop.xlane.xlu2 %690 }
 0x231   : > { %729 = vadd.xlane.f32.xlu1 %v728_v61  ;;  %v701_v4 = vsub.f32 %v642_v30, %v691_v3  ;;  %v1805_v9 = vpop.eup %1448  ;;  %v1022_v3 = vsel %vm963_vm4, %v955_v2, 0 }
 0x233   : > { %v715_v6 = vmul.f32 1.442695, %v701_v4  ;;  %v952_v4 = vld [vmem:[%s1968_s2] sm:$0x3] }
 0x234   : > { %v965_v5 = vsel %vm963_vm4, %v952_v4, 0 }
 0x235   : > { %1450 = vpow2.f32 %v715_v6 }
 0x23b   : > { %902 = vrot.lane.b32.xlu2 %v1736_v52, %s1569_s11  ;;  %v694_v52 = vpop.xlane.xlu0 %693 }
 0x23c   : > { %v702_v8 = vsub.f32 %v666_v36, %v694_v52 }
 0x23e   : > { %v798_v63 = vpop.permute.xlu1 %797  ;;  %v717_v10 = vmul.f32 1.442695, %v702_v8 }
 0x23f   : > { %v803_v0 = vsel %vm780_vm2, %v798_v63, 0  ;;  %775 = vrot.lane.b32.xlu0 %v1713_v22, %s1569_s11  ;;  %v713_v22 = vmul.f32 1.442695, %v700_v7  ;;  %v984_v63 = vsel %vm963_vm4, %v953_v62, 0 }
 0x240   : > { %812 = vmatpush.bf16.msra.mxu1 %v803_v0  ;;  %v954_v0 = vld [vmem:[%s1968_s2 + $0x4] sm:$0x3] }
 0x241   : > { %1452 = vpow2.f32 %v713_v22  ;;  %v1003_v1 = vsel %vm963_vm4, %v954_v0, 0 }
 0x242   : > { %1454 = vpow2.f32 %v717_v10 }
 0x243   : > { %860 = vrot.lane.b32.xlu2 %v1734_v49, %s1569_s11  ;;  %v1807_v49 = vpop.eup %1450 }
 0x244   : > { %v737_v11 = vsel %vm670_vm3, %v1807_v49, 0.0 }
 0x247   : > { %v1813_v12 = vpop.eup %1452 }
 0x248   : > { %v1815_v13 = vpop.eup %1454  ;;  %v734_v14 = vsel %vm670_vm3, %v1813_v12, 0.0 }
 0x249   : > { %v740_v15 = vsel %vm670_vm3, %v1815_v13, 0.0 }
 0x24a   : > { %923 = vrot.lane.b32.xlu1 %v1743_v56, %s1569_s11  ;;  %v731_v56 = vsel %vm670_vm3, %v1805_v9, 0.0 }
 0x269   : > { %732 = vadd.xlane.f32.xlu0 %v731_v56 }
 0x26c   : > { %738 = vadd.xlane.f32.xlu2 %v737_v11 }
 0x274   : > { %735 = vadd.xlane.f32.xlu1 %v734_v14  ;;  %741 = vadd.xlane.f32.xlu2 %v740_v15  ;;  %v956_v14 = vld [vmem:[%s1968_s2 + $0x8] sm:$0x3] }
 0x275   : > { %v1041_v15 = vsel %vm963_vm4, %v956_v14, 0 }
 0x28c   : > { %881 = vrot.lane.b32.xlu2 %v1729_v42, %s1569_s11 }
 0x28e   : > { %v721_v16 = vpop.xlane.xlu2 %720 }
 0x28f   : > { %1456 = vrcp.f32 %v721_v16  ;;  %v958_v16 = vld [vmem:[%s1968_s2 + $0xc] sm:$0x3] }
 0x295   : > { %v1457_v17 = vpop.eup %1456 }
 0x296   : > { %v751_v18 = vmul.f32 %v1457_v17, %v1782_v45  ;;  %v724_v19 = vpop.xlane.xlu2 %723  ;;  %v1079_v17 = vsel %vm963_vm4, %v958_v16, 0 }
 0x297   : > { %1458 = vrcp.f32 %v724_v19 }
 0x298   : > { %759 = vst.msk [vmem:[%s1828_s14] sm:$0xff] %vm670_vm3, %v751_v18  ;;  %v767_v38 = vpack.c.bf16 %v751_v18, %v751_v18  ;;  %v957_v18 = vld [vmem:[%s1968_s2 + $0xa] sm:$0x3] }
 0x299   : > { %v1060_v19 = vsel %vm963_vm4, %v957_v18, 0 }
 0x29d   : > { %v1459_v20 = vpop.eup %1458 }
 0x29e   : > { %v752_v42 = vmul.f32 %v1459_v20, %v1443_v51  ;;  %v727_v21 = vpop.xlane.xlu0 %726  ;;  %v903_v23 = vpop.permute.xlu2 %902  ;;  %v959_v20 = vld [vmem:[%s1968_s2 + $0xe] sm:$0x3] }
 0x29f   : > { %1460 = vrcp.f32 %v727_v21  ;;  %v908_v24 = vsel %vm780_vm2, %v903_v23, 0 }
 0x2a0   : > { %v768_v25 = vpack.c.bf16 %v752_v42, %v752_v42  ;;  %917 = vmatpush.bf16.msrb.mxu2 %v908_v24  ;;  %760 = vst.msk [vmem:[%s1828_s14 + $0x8] sm:$0xff] %vm670_vm3, %v752_v42  ;;  %v1098_v42 = vsel %vm963_vm4, %v959_v20, 0 }
 0x2a2   : > { %1352 = vmatmul.msk.bf16.vlgmr.msra.gmra.mxu1 %vm670_vm3, %v768_v25 }
 0x2a4   : > { %v730_v26 = vpop.xlane.xlu1 %729 }
 0x2a5   : > { %1462 = vrcp.f32 %v730_v26  ;;  %v1461_v27 = vpop.eup %1460 }
 0x2a6   : > { %v753_v28 = vmul.f32 %v1461_v27, %v1787_v58  ;;  %v861_v34 = vpop.permute.xlu2 %860 }
 0x2a7   : > { %v866_v37 = vsel %vm780_vm2, %v861_v34, 0 }
 0x2a8   : > { %v769_v29 = vpack.c.bf16 %v753_v28, %v753_v28  ;;  %761 = vst.msk [vmem:[%s1828_s14 + $0x10] sm:$0xff] %vm670_vm3, %v753_v28 }
 0x2aa   : > { %1353 = vmatmul.msk.bf16.vlgmr.msra.gmra.mxu2 %vm670_vm3, %v769_v29 }
 0x2ab   : > { %v1463_v30 = vpop.eup %1462  ;;  %1012 = vmatpush.bf16.msra.mxu2 %v1003_v1 }
 0x2ac   : > { %v754_v32 = vmul.f32 %v1463_v30, %v1791_v60 }
 0x2ae   : > { %v770_v33 = vpack.c.bf16 %v754_v32, %v754_v32  ;;  %762 = vst.msk [vmem:[%s1828_s14 + $0x18] sm:$0xff] %vm670_vm3, %v754_v32 }
 0x2b0   : > { %1354 = vmatmul.msk.bf16.vlgmr.msra.gmra.mxu3 %vm670_vm3, %v770_v33 }
 0x2b1   : > { %v776_v35 = vpop.permute.xlu0 %775 }
 0x2b2   : > { %v782_v36 = vsel %vm780_vm2, %v776_v35, 0 }
 0x2b3   : > { %791 = vmatpush.bf16.msra.mxu0 %v782_v36 }
 0x2b6   : > { %1351 = vmatmul.msk.bf16.vlgmr.msra.gmra.mxu0 %vm670_vm3, %v767_v38 }
 0x2b7   : > { %875 = vmatpush.bf16.msrb.mxu0 %v866_v37 }
 0x2bb   : > { %974 = vmatpush.bf16.msra.mxu0 %v965_v5 }
 0x2bc   : > { %v924_v39 = vpop.permute.xlu1 %923 }
 0x2bd   : > { %v929_v40 = vsel %vm780_vm2, %v924_v39, 0 }
 0x2be   : > { %938 = vmatpush.bf16.msrb.mxu3 %v929_v40 }
 0x2c2   : > { %1031 = vmatpush.bf16.msra.mxu3 %v1022_v3 }
 0x2dc   : > { %v733_v41 = vpop.xlane.xlu0 %732 }
 0x2dd   : > { %1464 = vrcp.f32 %v733_v41 }
 0x2df   : > { %v739_v43 = vpop.xlane.xlu2 %738 }
 0x2e0   : > { %1466 = vrcp.f32 %v739_v43 }
 0x2e3   : > { %v1465_v44 = vpop.eup %1464 }
 0x2e4   : > { %v755_v45 = vmul.f32 %v1465_v44, %v1805_v9 }
 0x2e6   : > { %v1467_v46 = vpop.eup %1466  ;;  %v771_v47 = vpack.c.bf16 %v755_v45, %v755_v45  ;;  %763 = vst.msk [vmem:[%s1828_s14 + $0x20] sm:$0xff] %vm670_vm3, %v755_v45 }
 0x2e7   : > { %v736_v48 = vpop.xlane.xlu1 %735  ;;  %v757_v50 = vmul.f32 %v1467_v46, %v1807_v49  ;;  %v742_v51 = vpop.xlane.xlu2 %741 }
 0x2e8   : > { %1468 = vrcp.f32 %v736_v48  ;;  %1355 = vmatmul.msk.bf16.vlgmr.msrb.gmra.mxu0 %vm670_vm3, %v771_v47 }
 0x2e9   : > { %1470 = vrcp.f32 %v742_v51  ;;  %v773_v53 = vpack.c.bf16 %v757_v50, %v757_v50  ;;  %765 = vst.msk [vmem:[%s1828_s14 + $0x30] sm:$0xff] %vm670_vm3, %v757_v50  ;;  %1050 = vmatpush.bf16.msrb.mxu0 %v1041_v15 }
 0x2eb   : > { %1357 = vmatmul.msk.bf16.vlgmr.msrb.gmra.mxu2 %vm670_vm3, %v773_v53 }
 0x2ec   : > { %1088 = vmatpush.bf16.msrb.mxu2 %v1079_v17 }
 0x2ee   : > { %v1469_v31 = vpop.eup %1468 }
 0x2ef   : > { %v1471_v54 = vpop.eup %1470  ;;  %v756_v55 = vmul.f32 %v1469_v31, %v1813_v12  ;;  %v882_v58 = vpop.permute.xlu2 %881 }
 0x2f0   : > { %v758_v57 = vmul.f32 %v1471_v54, %v1815_v13  ;;  %v887_v59 = vsel %vm780_vm2, %v882_v58, 0 }
 0x2f1   : > { %764 = vst.msk [vmem:[%s1828_s14 + $0x28] sm:$0xff] %vm670_vm3, %v756_v55  ;;  %896 = vmatpush.bf16.msrb.mxu1 %v887_v59  ;;  %v772_v61 = vpack.c.bf16 %v756_v55, %v756_v55 }
 0x2f2   : > { %v774_v60 = vpack.c.bf16 %v758_v57, %v758_v57  ;;  %766 = vst.msk [vmem:[%s1828_s14 + $0x38] sm:$0xff] %vm670_vm3, %v758_v57  ;;  %s1492_s14 = scalar_lea.hbm %s1971_s5, 128 }
 0x2f3   : > { %p1494_p1 = scmp.lt.s32.totalorder %s1492_s14, %s1488_s9 }
 0x2f4   : > { %1358 = vmatmul.msk.bf16.vlgmr.msrb.gmra.mxu3 %vm670_vm3, %v774_v60  ;;  %1356 = vmatmul.msk.bf16.vlgmr.msrb.gmra.mxu1 %vm670_vm3, %v772_v61 }
 0x2f5   : > { %993 = vmatpush.bf16.msra.mxu1 %v984_v63  ;;  %1107 = vmatpush.bf16.msrb.mxu3 %v1098_v42  ;;  %p1495_p2 = por %p1494_p1, %p1493_p0 }
 0x2f7   : > { %p1496_p3 = pnand %p1495_p2, %p1491_p13 }
 0x2f9   : > { %1069 = vmatpush.bf16.msrb.mxu1 %v1060_v19 }
 0x31f   : > { %v814_v6 = vpop.f32.mrf.mxu1 }
 0x320   : > { %v945_v52 = vpack.c.bf16 %v814_v6, %v814_v6 }
 0x322   : > { %1360 = vmatmul.msk.bf16.vlgmr.msra.gmra.mxu1 %vm482_vm1, %v945_v52 }
 0x327   : > { %v816_v7 = vpop.f32.mrf.mxu1 }
 0x32d   : > { %v835_v8 = vpop.f32.mrf.mxu2 }
 0x32e   : > { %v946_v9 = vpack.c.bf16 %v835_v8, %v835_v8 }
 0x330   : > { %1361 = vmatmul.msk.bf16.vlgmr.msra.gmra.mxu2 %vm482_vm1, %v946_v9 }
 0x333   : > { %v856_v22 = vpop.f32.mrf.mxu3  ;;  %v793_v49 = vpop.f32.mrf.mxu0 }
 0x334   : > { %v947_v10 = vpack.c.bf16 %v856_v22, %v856_v22  ;;  %v944_v56 = vpack.c.bf16 %v793_v49, %v793_v49 }
 0x335   : > { %v837_v11 = vpop.f32.mrf.mxu2 }
 0x336   : > { %1362 = vmatmul.msk.bf16.vlgmr.msra.gmra.mxu3 %vm482_vm1, %v947_v10  ;;  %1359 = vmatmul.msk.bf16.vlgmr.msra.gmra.mxu0 %vm482_vm1, %v944_v56 }
 0x33b   : > { %v858_v12 = vpop.f32.mrf.mxu3  ;;  %v795_v13 = vpop.f32.mrf.mxu0 }
 0x365   : > { %v877_v21 = vpop.f32.mrf.mxu0 }
 0x366   : > { %v948_v23 = vpack.c.bf16 %v877_v21, %v877_v21 }
 0x368   : > { %1363 = vmatmul.msk.bf16.vlgmr.msrb.gmra.mxu0 %vm482_vm1, %v948_v23 }
 0x36d   : > { %v879_v24 = vpop.f32.mrf.mxu0 }
 0x36e   : > { %v919_v25 = vpop.f32.mrf.mxu2 }
 0x36f   : > { %v950_v26 = vpack.c.bf16 %v919_v25, %v919_v25 }
 0x371   : > { %v898_v27 = vpop.f32.mrf.mxu1  ;;  %1365 = vmatmul.msk.bf16.vlgmr.msrb.gmra.mxu2 %vm482_vm1, %v950_v26 }
 0x372   : > { %v949_v28 = vpack.c.bf16 %v898_v27, %v898_v27 }
 0x374   : > { %1364 = vmatmul.msk.bf16.vlgmr.msrb.gmra.mxu1 %vm482_vm1, %v949_v28 }
 0x376   : > { %v921_v29 = vpop.f32.mrf.mxu2 }
 0x377   : > { %v940_v30 = vpop.f32.mrf.mxu3 }
 0x378   : > { %v951_v32 = vpack.c.bf16 %v940_v30, %v940_v30 }
 0x379   : > { %v900_v33 = vpop.f32.mrf.mxu1 }
 0x37a   : > { %1366 = vmatmul.msk.bf16.vlgmr.msrb.gmra.mxu3 %vm482_vm1, %v951_v32 }
 0x37f   : > { %v942_v34 = vpop.f32.mrf.mxu3 }
 0x380   : > { %1499 = shalt.err (!%p1496_p3)
}
 0x381   : > { %s1570_s15 = smov 128   ;;  %s1571_s23 = smov 8   ;;  %v1439_v2 = vld [vmem:[%s1969_s3] ss:$0 sm:$0xff] }
 0x382   : > { %1392 = dma.vmem_to_hbm [thread:$0]  (%p1640_p5), %s1167_s17, 1024, %s1169_s6, %s1140_s7, %s1570_s15, %s1570_s15, %s1571_s23  }
 0x383   : > { %s1268_s17 = sshll.u32 %s1824_s12, 3  ;;  %s1369_s25 = sshll.u32 %s1623_s22, 3 }
 0x384   : > { %s1150_s6 = scalar_lea.hbm %s1970_s4, %s1369_s25  ;;  %s219_s22 = scalar_lea.vmem [#allocation2], %s1268_s17 }
 0x385   : > { %s1152_s9 = sshll.u32 %s219_s22, 4  ;;  %s1154_s10 = sshll.u32 %s1150_s6, 4  ;;  %s1153_s9 = int_to_ptr.vmem [resolvable:$true] %s1152_s9  ;;  %s1155_s10 = int_to_ptr.hbm [resolvable:$true] %s1154_s10 }
 0x386   : > { %s1135_s11 = scalar_lea.sflag [#allocation3], %s1824_s12  ;;  %s1514_s14 = sshra.s32 %s1155_s10, 4  ;;  %s1515_s14 = int_to_ptr.hbm [resolvable:$true] %s1514_s14 }
 0x387   : > { %s1516_s13 = scalar_lea.hbm %s1515_s14, 8  ;;  %s1520_s23 = scalar_lea.hbm %s1970_s4, 16 }
 0x388   : > { %p1517_p4 = scmp.ne.s32.totalorder %s1515_s14, %s1516_s13  ;;  %p1521_p9 = scmp.lt.s32.totalorder %s1515_s14, %s1970_s4 }
 0x389   : > { %p1522_p10 = scmp.lt.s32.totalorder %s1520_s23, %s1516_s13 }
 0x38a   : > { %p1518_p7 = pnand %p1517_p4, %p1640_p5 }
 0x38b   : > { %p1523_p11 = por %p1522_p10, %p1521_p9 }
 0x38c   : > { %p1519_p8 = pneg %p1518_p7 }
 0x38e   : > { %p1524_p12 = pnand %p1523_p11, %p1519_p8 }
 0x39f   : > { %v995_v35 = vpop.f32.mrf.mxu1 }
 0x3a0   : > { %v1114_v46 = vsel %vm277_vm0, %v995_v35, 0.0 }
 0x3a7   : > { %v997_v36 = vpop.f32.mrf.mxu1 }
 0x3b3   : > { %v976_v37 = vpop.f32.mrf.mxu0  ;;  %v1014_v38 = vpop.f32.mrf.mxu2 }
 0x3b4   : > { %v1113_v45 = vsel %vm277_vm0, %v976_v37, 0.0  ;;  %v1116_v50 = vsel %vm277_vm0, %v1014_v38, 0.0 }
 0x3b5   : > { %v1115_v47 = vadd.f32 %v1114_v46, %v1113_v45 }
 0x3b7   : > { %v1117_v51 = vadd.f32 %v1116_v50, %v1115_v47 }
 0x3b9   : > { %v1033_v39 = vpop.f32.mrf.mxu3 }
 0x3ba   : > { %v1118_v53 = vsel %vm277_vm0, %v1033_v39, 0.0 }
 0x3bb   : > { %v978_v40 = vpop.f32.mrf.mxu0  ;;  %v1016_v41 = vpop.f32.mrf.mxu2  ;;  %v1119_v55 = vadd.f32 %v1118_v53, %v1117_v51 }
 0x3c1   : > { %v1035_v43 = vpop.f32.mrf.mxu3 }
 0x3e5   : > { %v1052_v44 = vpop.f32.mrf.mxu0 }
 0x3e6   : > { %v1120_v54 = vsel %vm277_vm0, %v1052_v44, 0.0 }
 0x3e7   : > { %v1121_v59 = vadd.f32 %v1120_v54, %v1119_v55 }
 0x3ed   : > { %v1054_v48 = vpop.f32.mrf.mxu0 }
 0x3f1   : > { %v1071_v31 = vpop.f32.mrf.mxu1 }
 0x3f2   : > { %v1122_v58 = vsel %vm277_vm0, %v1071_v31, 0.0 }
 0x3f3   : > { %v1123_v60 = vadd.f32 %v1122_v58, %v1121_v59 }
 0x3f4   : > { %v1090_v57 = vpop.f32.mrf.mxu2 }
 0x3f5   : > { %v1124_v61 = vsel %vm277_vm0, %v1090_v57, 0.0 }
 0x3f6   : > { %v1125_v63 = vadd.f32 %v1124_v61, %v1123_v60 }
 0x3f9   : > { %v1073_v62 = vpop.f32.mrf.mxu1 }
 0x3fc   : > { %v1092_v0 = vpop.f32.mrf.mxu2 }
 0x3fd   : > { %v1109_v1 = vpop.f32.mrf.mxu3 }
 0x3fe   : > { %v1126_v3 = vsel %vm277_vm0, %v1109_v1, 0.0 }
 0x3ff   : > { %v1127_v4 = vadd.f32 %v1126_v3, %v1125_v63 }
 0x401   : > { %v1132_v5 = vadd.f32 %v1439_v2, %v1127_v4 }
 0x403   : > { %1133 = vst.msk [vmem:[%s219_s22] sm:$0xff] %vm277_vm0, %v1132_v5 }
 0x404   : > { %1527 = shalt.err (!%p1524_p12)
}
 0x405   : > { %1391 = dma.vmem_to_hbm [thread:$0]  (%p1640_p5), %s1153_s9, 128, %s1155_s10, %s1135_s11   ;;  %v1111_v6 = vpop.f32.mrf.mxu3 }
 0x406 PF: > { %p1402_p13 = scmp.ge.s32.totalorder %s1566_s21, 2  ;;  %s1183_s12 = sand.u32 1, %s1554_s18  }
 0x407   : > { %s1184_s26 = scalar_lea.sflag [#allocation3], %s1183_s12 }
 0x408   : > { %p1396_p0 = pnand %p1402_p13, %p1644_p6 }
 0x40a   : > { %p1397_p1 = pneg %p1396_p0 }
 0x40c   : > { %1545 = dma.done.wait (%p1397_p1), %s1184_s26, 128  }
 0x40d   : > { %1547 = vsyncadd (%p1397_p1), %s1184_s26, 4294967168  ;;  %s1194_s30 = scalar_lea.sflag [#allocation5], %s1183_s12 }
 0x40e   : > { %1549 = dma.done.wait (%p1397_p1), %s1194_s30, 1024  }
 0x40f   : > { %1551 = vsyncadd (%p1397_p1), %s1194_s30, 4294966272  ;;  %p19_p5 = scmp.ge.s32.totalorder %s1627_s24, 4   ;;  %s1974_s18 = smov %s1558_s19 }
 0x410   : > { %s1975_s19 = smov %s1562_s20  ;;  %s1976_s20 = smov %s1638_s27 }
 0x411   : > { %s1977_s21 = smov %s1627_s24  ;;  %21 = sbr.rel (!%p19_p5) target bundleno = 5 (0x5), region = 88 }
 0x416   :  { %1200 = vsyncpa [#allocation3], 1 }
 0x417   :  { %1202 = vsyncpa [#allocation3 + $0x1], 1 }
 0x418   :  { %1203 = vsyncpa [#allocation5], 1 }
 0x419   :  { %1205 = vsyncpa [#allocation5 + $0x1], 1 }

</bundles_post_ra>
